<compile_context>
chip_gen: v6e
topology: v6e:2x2x1
jax: 0.10.0
libtpu: 0.0.40
codegen_flags: <defaults>
</compile_context>

<pallas_src>
import functools

import jax
import jax.numpy as jnp
from jax.experimental import pallas as pl
from jax.experimental.pallas import tpu as pltpu

_EPS = 1e-5
_VMEM_LIMIT = 32 << 20      # raise v5e's 16 MiB scoped default; fine on v6e/v7x
_BLOCK_BUDGET = 20 << 20    # per-step footprint budget (dbl-buffered IO + f32 temps)


# --------------------------------------------------------------------------- #
# Single-pass path: the whole batch of one lane tile is VMEM-resident.
# --------------------------------------------------------------------------- #
def _dial_kernel(x_ref, gamma_ref, beta_ref, o_ref):
    tc = x_ref.shape[1]
    start = pl.multiple_of(pl.program_id(0) * tc, 128)

    x = x_ref[...].astype(jnp.float32)                      # (N, tc)
    inv_n = jnp.float32(1.0 / x.shape[0])
    mean = jnp.sum(x, axis=0, keepdims=True) * inv_n        # (1, tc)
    centered = x - mean
    var = jnp.sum(centered * centered, axis=0, keepdims=True) * inv_n
    inv_std = jax.lax.rsqrt(var + _EPS)

    gamma = gamma_ref[:, pl.ds(start, tc)].astype(jnp.float32)
    beta = beta_ref[:, pl.ds(start, tc)].astype(jnp.float32)
    o_ref[...] = (centered * (gamma * inv_std) + beta).astype(o_ref.dtype)


def _dial_single_pass(x, gamma, beta, N, C, tc):
    n_blocks = pl.cdiv(C, tc)
    c_param = n_blocks * tc
    # Pad only the tiny (1, C) params so the in-kernel dynamic slice stays
    # in-bounds; x itself is NOT padded (ragged last lane block is clamped).
    if c_param != C:
        gamma = jnp.pad(gamma, ((0, 0), (0, c_param - C)))
        beta = jnp.pad(beta, ((0, 0), (0, c_param - C)))

    return pl.pallas_call(
        _dial_kernel,
        out_shape=jax.ShapeDtypeStruct((N, C), x.dtype),
        grid=(n_blocks,),
        in_specs=[
            pl.BlockSpec((N, tc), lambda j: (0, j)),
            pl.BlockSpec((1, c_param), lambda j: (0, 0)),   # resident, DMA'd once
            pl.BlockSpec((1, c_param), lambda j: (0, 0)),   # resident, DMA'd once
        ],
        out_specs=pl.BlockSpec((N, tc), lambda j: (0, j)),
        compiler_params=pltpu.CompilerParams(
            dimension_semantics=("parallel",),
            vmem_limit_bytes=_VMEM_LIMIT),
    )(x, gamma, beta)


# --------------------------------------------------------------------------- #
# Large-N fallback: two passes over HBM (stats accumulation, then apply).
# --------------------------------------------------------------------------- #
def _stats_kernel(x_ref, s_ref, *, n_rows):
    i = pl.program_id(1)

    @pl.when(i == 0)
    def _():
        s_ref[...] = jnp.zeros_like(s_ref)

    x = x_ref[...].astype(jnp.float32)                      # (tn, tc)
    row = jax.lax.broadcasted_iota(jnp.int32, x.shape, 0) + i * x.shape[0]
    x = jnp.where(row < n_rows, x, 0.0)                     # mask ragged N rows
    s_ref[...] += jnp.concatenate(
        [jnp.sum(x, axis=0, keepdims=True),
         jnp.sum(x * x, axis=0, keepdims=True)], axis=0)


def _apply_kernel(x_ref, scale_ref, shift_ref, o_ref):
    o_ref[...] = (x_ref[...].astype(jnp.float32) * scale_ref[...]
                  + shift_ref[...]).astype(o_ref.dtype)


def _dial_two_pass(x, gamma, beta, N, C, itemsize, budget):
    tc = min(512, pl.cdiv(C, 128) * 128)
    per_row = tc * (4 * itemsize + 12)
    tn = max(8, (budget // per_row) // 8 * 8)
    tn = min(tn, pl.cdiv(N, 8) * 8)
    nc, nn = pl.cdiv(C, tc), pl.cdiv(N, tn)

    stats = pl.pallas_call(
        functools.partial(_stats_kernel, n_rows=N),
        out_shape=jax.ShapeDtypeStruct((2, C), jnp.float32),
        grid=(nc, nn),
        in_specs=[pl.BlockSpec((tn, tc), lambda j, i: (i, j))],
        out_specs=pl.BlockSpec((2, tc), lambda j, i: (0, j)),
        compiler_params=pltpu.CompilerParams(
            dimension_semantics=("parallel", "arbitrary"),
            vmem_limit_bytes=_VMEM_LIMIT),
    )(x)

    mean = stats[0:1, :] / N
    var = jnp.maximum(stats[1:2, :] / N - mean * mean, 0.0)
    inv_std = jax.lax.rsqrt(var + _EPS)
    scale = gamma.astype(jnp.float32) * inv_std
    shift = beta.astype(jnp.float32) - mean * scale

    return pl.pallas_call(
        _apply_kernel,
        out_shape=jax.ShapeDtypeStruct((N, C), x.dtype),
        grid=(nc, nn),
        in_specs=[pl.BlockSpec((tn, tc), lambda j, i: (i, j)),
                  pl.BlockSpec((1, tc), lambda j, i: (0, j)),
                  pl.BlockSpec((1, tc), lambda j, i: (0, j))],
        out_specs=pl.BlockSpec((tn, tc), lambda j, i: (i, j)),
        compiler_params=pltpu.CompilerParams(
            dimension_semantics=("parallel", "parallel"),
            vmem_limit_bytes=_VMEM_LIMIT),
    )(x, scale, shift)


# --------------------------------------------------------------------------- #
# Public wrapper
# --------------------------------------------------------------------------- #
def dial_forward(x, gamma, beta, is_source=True, *,
                 block_budget_bytes=_BLOCK_BUDGET):
    """x: (N, C); gamma, beta: (1, C). Returns (N, C) with x's dtype."""
    del is_source  # training-mode forward is identical for bn_S / bn_T
    N, C = x.shape
    itemsize = jnp.dtype(x.dtype).itemsize
    c128 = pl.cdiv(C, 128) * 128

    # Per-lane footprint: double-buffered x-in + out blocks plus ~3 f32 temps
    # (upcast, centered, output temp) — counted so v7x's 64 MiB VMEM is safe.
    per_lane = 4 * N * itemsize + 3 * N * 4
    tc = (block_budget_bytes // per_lane) // 128 * 128
    tc = min(tc, c128)

    if tc >= 128:
        return _dial_single_pass(x, gamma, beta, N, C, tc)
    return _dial_two_pass(x, gamma, beta, N, C, itemsize, block_budget_bytes)


def _reference(x, gamma, beta):
    mean = jnp.mean(x, axis=0, keepdims=True)
    var = jnp.mean((x - mean) ** 2, axis=0, keepdims=True)
    return gamma * ((x - mean) / jnp.sqrt(var + _EPS)) + beta


if __name__ == "__main__":
    key = jax.random.PRNGKey(0)
    k_x, k_gamma = jax.random.split(key)

    N, C = 8, 32  # batch, num_features (small; C ragged vs. 128 on purpose)
    x = jax.random.normal(k_x, (N, C), dtype=jnp.float32)

    # deterministic parameter init mirroring reset_parameters():
    #   gamma ~ uniform_(0, 1), beta = 0
    gamma = jax.random.uniform(k_gamma, (1, C), dtype=jnp.float32)
    beta = jnp.zeros((1, C), dtype=jnp.float32)

    ref = _reference(x, gamma, beta)

    # main (single-pass, whole batch resident) path
    out = jax.block_until_ready(dial_forward(x, gamma, beta, is_source=True))
    assert out.shape == (N, C)
    assert jnp.allclose(out, ref, atol=1e-5, rtol=1e-5)

    # force the large-N two-pass fallback with a tiny budget and check it too
    out_fb = jax.block_until_ready(
        dial_forward(x, gamma, beta, is_source=False, block_budget_bytes=1 << 14))
    assert out_fb.shape == (N, C)
    assert jnp.allclose(out_fb, ref, atol=1e-5, rtol=1e-5)

    print("KERNEL_OK")
</pallas_src>

<mosaic_0001>
module attributes {stable_mosaic.version = 11 : i64} {
  func.func @_dial_kernel(%arg0: i32, %arg1: memref<8x128xf32, #tpu.memory_space<vmem>>, %arg2: memref<1x128xf32, #tpu.memory_space<vmem>>, %arg3: memref<1x128xf32, #tpu.memory_space<vmem>>, %arg4: memref<8x128xf32, #tpu.memory_space<vmem>>) attributes {dimension_semantics = [#tpu.dimension_semantics<parallel>], iteration_bounds = array<i64: 1>, scalar_prefetch = 0 : i64, scratch_operands = 0 : i64, tpu.core_type = #tpu.core_type<tc>, window_params = [{transform_indices = @transform_0, window_bounds = array<i64: 8, 128>}, {pipeline_mode = #tpu.pipeline_mode<synchronous>, transform_indices = @transform_1, window_bounds = array<i64: 1, 128>}, {pipeline_mode = #tpu.pipeline_mode<synchronous>, transform_indices = @transform_2, window_bounds = array<i64: 1, 128>}, {transform_indices = @transform_3, window_bounds = array<i64: 8, 128>}]} {
    %c128_i32 = arith.constant 128 : i32
    %0 = arith.muli %arg0, %c128_i32 : i32
    %1 = tpu.assume_multiple %0, 128 : i32
    %c0 = arith.constant 0 : index
    %c0_0 = arith.constant 0 : index
    %2 = vector.load %arg1[%c0, %c0_0] : memref<8x128xf32, #tpu.memory_space<vmem>>, vector<8x128xf32>
    %cst = arith.constant dense<0.000000e+00> : vector<128xf32>
    %3 = vector.multi_reduction <add>, %2, %cst [0] : vector<8x128xf32> to vector<128xf32>
    %4 = vector.shape_cast %3 : vector<128xf32> to vector<1x128xf32>
    %cst_1 = arith.constant 1.250000e-01 : f32
    %5 = vector.broadcast %cst_1 : f32 to vector<1x128xf32>
    %6 = arith.mulf %4, %5 : vector<1x128xf32>
    %7 = vector.broadcast %6 : vector<1x128xf32> to vector<8x128xf32>
    %8 = arith.subf %2, %7 : vector<8x128xf32>
    %9 = arith.mulf %8, %8 : vector<8x128xf32>
    %cst_2 = arith.constant dense<0.000000e+00> : vector<128xf32>
    %10 = vector.multi_reduction <add>, %9, %cst_2 [0] : vector<8x128xf32> to vector<128xf32>
    %11 = vector.shape_cast %10 : vector<128xf32> to vector<1x128xf32>
    %cst_3 = arith.constant 1.250000e-01 : f32
    %12 = vector.broadcast %cst_3 : f32 to vector<1x128xf32>
    %13 = arith.mulf %11, %12 : vector<1x128xf32>
    %cst_4 = arith.constant 9.99999974E-6 : f32
    %14 = vector.broadcast %cst_4 : f32 to vector<1x128xf32>
    %15 = arith.addf %13, %14 : vector<1x128xf32>
    %16 = math.rsqrt %15 : vector<1x128xf32>
    %c0_5 = arith.constant 0 : index
    %17 = arith.index_cast %1 : i32 to index
    %18 = vector.load %arg2[%c0_5, %17] : memref<1x128xf32, #tpu.memory_space<vmem>>, vector<1x128xf32>
    %c0_6 = arith.constant 0 : index
    %19 = arith.index_cast %1 : i32 to index
    %20 = vector.load %arg3[%c0_6, %19] : memref<1x128xf32, #tpu.memory_space<vmem>>, vector<1x128xf32>
    %21 = arith.mulf %18, %16 : vector<1x128xf32>
    %22 = vector.broadcast %21 : vector<1x128xf32> to vector<8x128xf32>
    %23 = arith.mulf %8, %22 : vector<8x128xf32>
    %24 = vector.broadcast %20 : vector<1x128xf32> to vector<8x128xf32>
    %25 = arith.addf %23, %24 : vector<8x128xf32>
    %c0_7 = arith.constant 0 : index
    %c0_8 = arith.constant 0 : index
    %26 = vector.load %arg4[%c0_7, %c0_8] : memref<8x128xf32, #tpu.memory_space<vmem>>, vector<8x128xf32>
    tpu.vector_store %arg4[%c0_7, %c0_8], %25 {strides = array<i32>} : memref<8x128xf32, #tpu.memory_space<vmem>>, vector<8x128xf32>,
    return
  }
  func.func @transform_0(%arg0: i32) -> (i32, i32) {
    %c0_i32 = arith.constant 0 : i32
    %c0_i32_0 = arith.constant 0 : i32
    return %c0_i32, %arg0 : i32, i32
  }
  func.func @transform_1(%arg0: i32) -> (i32, i32) {
    %c0_i32 = arith.constant 0 : i32
    %c0_i32_0 = arith.constant 0 : i32
    %c0_i32_1 = arith.constant 0 : i32
    return %c0_i32, %c0_i32_0 : i32, i32
  }
  func.func @transform_2(%arg0: i32) -> (i32, i32) {
    %c0_i32 = arith.constant 0 : i32
    %c0_i32_0 = arith.constant 0 : i32
    %c0_i32_1 = arith.constant 0 : i32
    return %c0_i32, %c0_i32_0 : i32, i32
  }
  func.func @transform_3(%arg0: i32) -> (i32, i32) {
    %c0_i32 = arith.constant 0 : i32
    %c0_i32_0 = arith.constant 0 : i32
    return %c0_i32, %arg0 : i32, i32
  }
}

</mosaic_0001>

<bundles_post_ra>
// kernel: tpu_custom_call.1
= control target key start
LH: loop header
LB: loop body
LE: loop exit
PB: predicated region body
PF: predicated region fallthrough
CT: control target
= control target key end

     0   :  { %8 = vsyncpa [#allocation3], 0  ;;  %s169_s0 = inlined_call_operand.hbm [shape: f32[8,32], index: 0, kind: input, shape index: {}]   ;;  %s170_s1 = inlined_call_operand.vmem [shape: f32[1,128], index: 1, kind: input, shape index: {}]   ;;  %s171_s2 = inlined_call_operand.vmem [shape: f32[1,128], index: 2, kind: input, shape index: {}]   ;;  %s172_s3 = inlined_call_operand.hbm [shape: f32[8,32], index: 3, kind: output, shape index: {}]  }
   0x1   :  { %9 = vsyncpa [#allocation4], 0  ;;  %s135_s12 = smov [#allocation2]  }
   0x2   :  { %s16_s13 = sshll.u32 %s135_s12, 4  ;;  %s17_s13 = int_to_ptr.vmem [resolvable:$true] %s16_s13 }
   0x3   :  { %s99_s14 = scalar_lea.vmem %s17_s13, 128  ;;  %p104_p1 = scmp.lt.s32.totalorder %s17_s13, %s17_s13 }
   0x4   :  { %p100_p0 = scmp.ne.s32.totalorder %s17_s13, %s99_s14  ;;  %p105_p2 = scmp.lt.s32.totalorder %s99_s14, %s99_s14 }
   0x6   :  { %p106_p3 = por %p105_p2, %p104_p1 }
   0x8   :  { %p107_p4 = pnand %p106_p3, %p100_p0 }
   0xa   :  { %110 = shalt.err (!%p107_p4)
}
   0xb   :  { %19 = dma.hbm_to_vmem [thread:$0]  %s169_s0, 128, %s17_s13, [#allocation3]  }
   0xc   :  { %131 = dma.done.wait [#allocation3], 128  }
   0xd   :  { %132 = vsyncadd [#allocation3], 4294967168  ;;  %v28_v0 = vld [vmem:[#allocation2] sm:$0xff]  ;;  %v55_v18 = vlaneseq  ;;  %s136_s20 = smov [#allocation5]  }
   0xe   :  { %v29_v1 = vrot.slane %v28_v0, 4  ;;  %v50_v20 = vld [vmem:[%s170_s1] sm:$0x1]  ;;  %s75_s21 = sshll.u32 %s136_s20, 4  ;;  %s76_s21 = int_to_ptr.vmem [resolvable:$true] %s75_s21 }
   0xf   :  { %v56_v19 = vshrl.u32 %v55_v18, 7  ;;  %v86_v25 = vld [vmem:[%s171_s2] ss:$0 sm:$0xff]  ;;  %s111_s22 = scalar_lea.vmem %s76_s21, 128  ;;  %p116_p6 = scmp.lt.s32.totalorder %s76_s21, %s76_s21 }
  0x10   :  { %v30_v2 = vadd.f32 %v29_v1, %v28_v0  ;;  %p112_p5 = scmp.ne.s32.totalorder %s76_s21, %s111_s22  ;;  %p117_p7 = scmp.lt.s32.totalorder %s111_s22, %s111_s22 }
  0x11   :  { %v57_v21 = vsub.s32 0, %v56_v19 }
  0x12   :  { %v31_v3 = vrot.slane %v30_v2, 2  ;;  %p118_p8 = por %p117_p7, %p116_p6 }
  0x14   :  { %v32_v4 = vadd.f32 %v31_v3, %v30_v2  ;;  %p119_p9 = pnand %p118_p8, %p112_p5 }
  0x16   :  { %v33_v5 = vrot.slane %v32_v4, 1 }
  0x18   :  { %v34_v6 = vadd.f32 %v33_v5, %v32_v4 }
  0x1a   :  { %v35_v7 = vmul.f32 0.125, %v34_v6 }
  0x1c   :  { %v36_v8 = vsub.f32 %v28_v0, %v35_v7 }
  0x1e   :  { %v37_v9 = vmul.f32 %v36_v8, %v36_v8 }
  0x20   :  { %v38_v10 = vrot.slane %v37_v9, 4 }
  0x22   :  { %v39_v11 = vadd.f32 %v38_v10, %v37_v9 }
  0x24   :  { %v40_v12 = vrot.slane %v39_v11, 2 }
  0x26   :  { %v41_v13 = vadd.f32 %v40_v12, %v39_v11 }
  0x28   :  { %v42_v14 = vrot.slane %v41_v13, 1 }
  0x2a   :  { %v43_v15 = vadd.f32 %v42_v14, %v41_v13 }
  0x2c   :  { %v44_v16 = vmul.f32 0.125, %v43_v15 }
  0x2e   :  { %v45_v17 = vadd.f32 1e-05, %v44_v16 }
  0x30   :  { %89 = vrsqrt.f32 %v45_v17 }
  0x3d   :  { %v90_v22 = vpop.eup %89 }
  0x3e   :  { %v53_v23 = vmul.f32 %v90_v22, %v50_v20 }
  0x40   :  { %v58_v24 = vrot.slane %v53_v23, %v57_v21 }
  0x42   :  { %v60_v26 = vmul.f32 %v58_v24, %v36_v8 }
  0x44   :  { %v67_v27 = vadd.f32 %v86_v25, %v60_v26 }
  0x46   :  { %68 = vst [vmem:[#allocation5] sm:$0xff] %v67_v27 }
  0x47   :  { %122 = shalt.err (!%p119_p9)
}
  0x48   :  { %78 = dma.vmem_to_hbm [thread:$0]  %s76_s21, 128, %s172_s3, [#allocation4]  }
  0x49   :  { %133 = dma.done.wait [#allocation4], 128  }
  0x4a   :  { %134 = vsyncadd [#allocation4], 4294967168 }
  0x4b   :  { %82 = vsyncpa [#allocation3], 1 }
  0x4c   :  { %83 = vsyncpa [#allocation4], 1 }

</bundles_post_ra>
